<compile_context>
chip_gen: v7x
topology: tpu7x:2x2x1
jax: 0.10.0
libtpu: 0.0.40
codegen_flags: <defaults>
</compile_context>

<pallas_src>
import numpy as np
import jax
import jax.numpy as jnp
from jax.experimental import pallas as pl
from jax.experimental.pallas import tpu as pltpu


# ----------------------------------------------------------------------------
# Offline operator construction (parameter / shape setup, no input data)
# ----------------------------------------------------------------------------
def _pool_matrix(H, W, k):
    """Adaptive average pool (H,W)->(k,k) as a (k*k, H*W) matrix (PyTorch bins)."""
    P = np.zeros((k * k, H * W), dtype=np.float64)
    for i in range(k):
        r0 = (i * H) // k
        r1 = -((-(i + 1) * H) // k)          # ceil((i+1)*H/k)
        for j in range(k):
            c0 = (j * W) // k
            c1 = -((-(j + 1) * W) // k)
            inv_area = 1.0 / ((r1 - r0) * (c1 - c0))
            for r in range(r0, r1):
                for c in range(c0, c1):
                    P[i * k + j, r * W + c] = inv_area
    return P


def _upsample_matrix(H, W, k):
    """Bilinear (align_corners=True) upsample (k,k)->(H,W) as (H*W, k*k) matrix."""
    U = np.zeros((H * W, k * k), dtype=np.float64)
    if k == 1:
        U[:, 0] = 1.0
        return U
    for oh in range(H):
        sh = oh * (k - 1) / (H - 1)
        h0 = int(np.floor(sh)); h1 = min(h0 + 1, k - 1); dh = sh - h0
        for ow in range(W):
            sw = ow * (k - 1) / (W - 1)
            w0 = int(np.floor(sw)); w1 = min(w0 + 1, k - 1); dw = sw - w0
            o = oh * W + ow
            U[o, h0 * k + w0] += (1 - dh) * (1 - dw)
            U[o, h0 * k + w1] += (1 - dh) * dw
            U[o, h1 * k + w0] += dh * (1 - dw)
            U[o, h1 * k + w1] += dh * dw
    return U


def build_operator(H, W, pool_sizes, conv_w, conv_b, gamma, beta, rmean, rvar,
                   eps, dtype=jnp.float32):
    """Fold pool -> up -> concat -> 1x1 conv -> BN(eval) affine into (M, c):
       att_pre_row = y1_row @ M + c,  att = sigmoid(att_pre_row).
       For large N, pass dtype=jnp.bfloat16 to halve M's resident VMEM footprint
       (the kernel accumulates in f32 via preferred_element_type)."""
    N = H * W
    M0 = conv_w[0] * np.eye(N)                                # y1 channel of concat
    for idx, k in enumerate(pool_sizes):
        A = _upsample_matrix(H, W, k) @ _pool_matrix(H, W, k)  # (N, N)
        M0 = M0 + conv_w[idx + 1] * A
    s = gamma / np.sqrt(rvar + eps)
    t = beta - rmean * s
    M = (M0.T * s).astype(np.float32)        # row-vector convention: y1 @ M
    c = float(conv_b * s + t)
    return jnp.asarray(M, dtype), c


# ----------------------------------------------------------------------------
# Pallas kernel
# ----------------------------------------------------------------------------
def _make_kernel(bt, C, N, c_offset, out_dtype):
    inv_c = 1.0 / float(C)

    def kernel(y_ref, x_ref, m_ref, o_ref):
        # y_ref / x_ref / o_ref: (bt*C, N) dense tiles; m_ref: (N, N) operator.
        yf = y_ref[...].astype(jnp.float32)
        xf = x_ref[...].astype(jnp.float32)

        # Channel mean per batch element -> (bt, N): static sublane slices +
        # sublane reductions, assembled with a sublane concat (no reshapes).
        y1 = jnp.concatenate(
            [jnp.sum(yf[b * C:(b + 1) * C, :], axis=0, keepdims=True)
             for b in range(bt)],
            axis=0) * inv_c                                            # (bt, N)

        # One batched MXU matmul for the folded pool/up/conv/BN operator,
        # conv-bias + BN offset baked in as a trace-time scalar.
        att_pre = jnp.dot(y1, m_ref[...],
                          preferred_element_type=jnp.float32) + c_offset
        att = jax.nn.sigmoid(att_pre)                                  # (bt, N)

        # Broadcast att back to every channel row of its batch element, then do
        # one fully dense (bt*C, N) elementwise store.
        att_full = jnp.concatenate(
            [jnp.broadcast_to(att[b:b + 1, :], (C, N)) for b in range(bt)],
            axis=0)                                                    # (bt*C, N)
        o_ref[...] = (xf * att_full + yf).astype(out_dtype)

    return kernel


def _choose_batch_block(B, C, N, itemsize, m_bytes, budget_bytes):
    """Largest batch block per grid step that (a) keeps the BlockSpec legal
    (bt*C multiple of 8 sublanes, or the full array), (b) fits the VMEM budget,
    and (c) when possible leaves >= 2 grid steps so both v7x TensorCores work."""
    legal = [d for d in range(1, B + 1)
             if B % d == 0 and (d == B or (d * C) % 8 == 0)]

    def fits(d):
        return 3 * 2 * d * C * N * itemsize + 2 * m_bytes <= budget_bytes

    fitting = [d for d in legal if fits(d)] or legal
    multi = [d for d in fitting if B // d >= 2 and d * C >= 8]
    return max(multi) if multi else max(fitting)


def cmpa2a_forward(y, x, M, c_offset, *, vmem_budget_bytes=16 * 1024 * 1024):
    B, C, H, W = y.shape
    assert x.shape == y.shape
    N = H * W
    out_dtype = y.dtype
    itemsize = y.dtype.itemsize
    m_bytes = M.size * M.dtype.itemsize

    # Flatten (B, C, H, W) -> (B*C, N): free contiguous collapse, channels pack
    # sublanes densely and N fills lanes.  No dtype upcast in the wrapper.
    y2 = y.reshape(B * C, N)
    x2 = x.reshape(B * C, N)

    bt = _choose_batch_block(B, C, N, itemsize, m_bytes, vmem_budget_bytes)
    rows = bt * C
    grid = (B // bt,)

    kernel = _make_kernel(bt, C, N, float(c_offset), out_dtype)

    blk_bytes = rows * N * itemsize
    cost = pl.CostEstimate(
        flops=int(2 * B * N * N + 4 * B * C * N),
        transcendentals=int(B * N),
        bytes_accessed=int(3 * B * C * N * itemsize + m_bytes),
    )
    # Explicit VMEM budget: double-buffered y/x/o blocks + (conservatively)
    # double-buffered M + headroom, clamped below the smallest physical VMEM
    # (64 MiB on v7x).
    vmem_limit = int(min(2 * m_bytes + 3 * 2 * blk_bytes + (16 << 20), 64 << 20))
    # TODO(synk): for very large H*W (N^2 * itemsize approaching the VMEM budget,
    # e.g. 64 MiB on v7x) M should additionally be tiled over its contraction
    # axis with an f32 accumulator; not needed at these shapes.

    out = pl.pallas_call(
        kernel,
        out_shape=jax.ShapeDtypeStruct((B * C, N), out_dtype),
        grid_spec=pl.GridSpec(
            grid=grid,
            in_specs=[
                pl.BlockSpec((rows, N), lambda i: (i, 0)),   # y rows
                pl.BlockSpec((rows, N), lambda i: (i, 0)),   # x rows
                pl.BlockSpec((N, N), lambda i: (0, 0)),      # M, VMEM-resident
            ],
            out_specs=pl.BlockSpec((rows, N), lambda i: (i, 0)),
        ),
        compiler_params=pltpu.CompilerParams(
            dimension_semantics=("parallel",),
            vmem_limit_bytes=vmem_limit,
        ),
        cost_estimate=cost,
    )(y2, x2, M)
    return out.reshape(B, C, H, W)


# ----------------------------------------------------------------------------
# Pure-JAX reference (direct pooling / interpolation, no matrix folding)
# ----------------------------------------------------------------------------
def _adaptive_avg_pool_ref(y1, k):
    _, _, H, W = y1.shape
    rows = []
    for i in range(k):
        r0 = (i * H) // k; r1 = -((-(i + 1) * H) // k)
        cols = []
        for j in range(k):
            c0 = (j * W) // k; c1 = -((-(j + 1) * W) // k)
            cols.append(jnp.mean(y1[:, :, r0:r1, c0:c1], axis=(-2, -1)))
        rows.append(jnp.stack(cols, axis=-1))
    return jnp.stack(rows, axis=-2)          # (B,1,k,k)


def _bilinear_up_ref(p, H, W):
    k = p.shape[-1]
    if k == 1:
        return jnp.broadcast_to(p, p.shape[:2] + (H, W))
    sh = np.arange(H) * (k - 1) / (H - 1)
    sw = np.arange(W) * (k - 1) / (W - 1)
    h0 = np.floor(sh).astype(np.int32); h1 = np.minimum(h0 + 1, k - 1); dh = sh - h0
    w0 = np.floor(sw).astype(np.int32); w1 = np.minimum(w0 + 1, k - 1); dw = sw - w0
    p_h0 = p[..., h0, :]; p_h1 = p[..., h1, :]
    p00 = p_h0[..., w0]; p01 = p_h0[..., w1]
    p10 = p_h1[..., w0]; p11 = p_h1[..., w1]
    dh_ = jnp.asarray(dh, jnp.float32)[:, None]
    dw_ = jnp.asarray(dw, jnp.float32)[None, :]
    return (p00 * (1 - dh_) * (1 - dw_) + p01 * (1 - dh_) * dw_
            + p10 * dh_ * (1 - dw_) + p11 * dh_ * dw_)


def cmpa2a_ref(y, x, pool_sizes, conv_w, conv_b, gamma, beta, rmean, rvar, eps):
    _, _, H, W = y.shape
    y1 = jnp.mean(y, axis=1, keepdims=True)
    feats = [y1]
    for k in pool_sizes:
        feats.append(_bilinear_up_ref(_adaptive_avg_pool_ref(y1, k), H, W))
    y2 = jnp.concatenate(feats, axis=1)
    z = jnp.einsum('bchw,c->bhw', y2, jnp.asarray(conv_w, jnp.float32)) + conv_b
    att = jax.nn.sigmoid((z - rmean) / jnp.sqrt(rvar + eps) * gamma + beta)[:, None]
    return x * att + y


# ----------------------------------------------------------------------------
if __name__ == "__main__":
    B, C, H, W = 2, 4, 16, 16
    pool_sizes = [1, 2, 3, 5]
    if W > 15:
        pool_sizes.append(10)
    if W > 30:
        pool_sizes.append(15)
    if W > 60:
        pool_sizes.append(30)
    ch = 1 + len(pool_sizes)                 # matches Conv2d(ch, 1, kernel_size=1)

    # Deterministic synthetic parameters (Conv2d(ch,1,1) + BatchNorm2d(1), eval mode).
    conv_w = np.linspace(-0.6, 0.6, ch).astype(np.float32)
    conv_b = np.float32(0.05)
    gamma, beta = np.float32(1.1), np.float32(-0.05)
    rmean, rvar, eps = np.float32(0.02), np.float32(0.9), np.float32(1e-5)
    # TODO(synk): BatchNorm2d in training mode would use batch statistics; eval-mode
    # affine with synthetic running stats is used here.

    M, c = build_operator(H, W, pool_sizes, conv_w, conv_b,
                          gamma, beta, rmean, rvar, eps)

    key = jax.random.PRNGKey(0)
    ky, kx = jax.random.split(key)
    y = jax.random.normal(ky, (B, C, H, W), jnp.float32)
    x = jax.random.normal(kx, (B, C, H, W), jnp.float32)

    out = jax.block_until_ready(cmpa2a_forward(y, x, M, c))
    ref = cmpa2a_ref(y, x, pool_sizes, conv_w, conv_b, gamma, beta, rmean, rvar, eps)

    assert out.shape == (B, C, H, W)
    np.testing.assert_allclose(np.asarray(out), np.asarray(ref), rtol=1e-3, atol=1e-3)
    print("KERNEL_OK")
</pallas_src>

<mosaic_0001>
module attributes {stable_mosaic.version = 11 : i64} {
  func.func @kernel(%arg0: i32, %arg1: memref<8x256xf32, #tpu.memory_space<vmem>>, %arg2: memref<8x256xf32, #tpu.memory_space<vmem>>, %arg3: memref<256x256xf32, #tpu.memory_space<vmem>>, %arg4: memref<8x256xf32, #tpu.memory_space<vmem>>) attributes {dimension_semantics = [#tpu.dimension_semantics<parallel>], iteration_bounds = array<i64: 1>, scalar_prefetch = 0 : i64, scratch_operands = 0 : i64, tpu.core_type = #tpu.core_type<tc>, window_params = [{transform_indices = @transform_0, window_bounds = array<i64: 8, 256>}, {transform_indices = @transform_1, window_bounds = array<i64: 8, 256>}, {pipeline_mode = #tpu.pipeline_mode<synchronous>, transform_indices = @transform_2, window_bounds = array<i64: 256, 256>}, {transform_indices = @transform_3, window_bounds = array<i64: 8, 256>}]} {
    %c0 = arith.constant 0 : index
    %c0_0 = arith.constant 0 : index
    %0 = vector.load %arg1[%c0, %c0_0] : memref<8x256xf32, #tpu.memory_space<vmem>>, vector<8x256xf32>
    %c0_1 = arith.constant 0 : index
    %c0_2 = arith.constant 0 : index
    %1 = vector.load %arg2[%c0_1, %c0_2] : memref<8x256xf32, #tpu.memory_space<vmem>>, vector<8x256xf32>
    %2 = vector.extract_strided_slice %0 {offsets = [0, 0], sizes = [4, 256], strides = [1, 1]} : vector<8x256xf32> to vector<4x256xf32>
    %cst = arith.constant dense<0.000000e+00> : vector<256xf32>
    %3 = vector.multi_reduction <add>, %2, %cst [0] : vector<4x256xf32> to vector<256xf32>
    %4 = vector.shape_cast %3 : vector<256xf32> to vector<1x256xf32>
    %5 = vector.extract_strided_slice %0 {offsets = [4, 0], sizes = [4, 256], strides = [1, 1]} : vector<8x256xf32> to vector<4x256xf32>
    %cst_3 = arith.constant dense<0.000000e+00> : vector<256xf32>
    %6 = vector.multi_reduction <add>, %5, %cst_3 [0] : vector<4x256xf32> to vector<256xf32>
    %7 = vector.shape_cast %6 : vector<256xf32> to vector<1x256xf32>
    %8 = tpu.concatenate %4, %7 in 0 : vector<1x256xf32>, vector<1x256xf32> -> vector<2x256xf32>
    %cst_4 = arith.constant 2.500000e-01 : f32
    %9 = vector.broadcast %cst_4 : f32 to vector<2x256xf32>
    %10 = arith.mulf %8, %9 : vector<2x256xf32>
    %c0_5 = arith.constant 0 : index
    %c0_6 = arith.constant 0 : index
    %11 = vector.load %arg3[%c0_5, %c0_6] : memref<256x256xf32, #tpu.memory_space<vmem>>, vector<256x256xf32>
    %cst_7 = arith.constant dense<0.000000e+00> : vector<2x256xf32>
    %12 = tpu.matmul %10, %11, %cst_7 {dimension_numbers = #tpu.dot_dimension_numbers<[1], [0], [0], [1], [0, 0, 1, 1], [], []>} : vector<2x256xf32>, vector<256x256xf32>, vector<2x256xf32> -> vector<2x256xf32>
    %cst_8 = arith.constant -0.0152151398 : f32
    %13 = vector.broadcast %cst_8 : f32 to vector<2x256xf32>
    %14 = arith.addf %12, %13 : vector<2x256xf32>
    %15 = arith.negf %14 : vector<2x256xf32>
    %16 = math.exp %15 : vector<2x256xf32>
    %cst_9 = arith.constant 1.000000e+00 : f32
    %17 = vector.broadcast %cst_9 : f32 to vector<2x256xf32>
    %18 = arith.addf %17, %16 : vector<2x256xf32>
    %19 = arith.divf %17, %18 : vector<2x256xf32>
    %20 = vector.extract_strided_slice %19 {offsets = [0, 0], sizes = [1, 256], strides = [1, 1]} : vector<2x256xf32> to vector<1x256xf32>
    %21 = vector.shape_cast %20 : vector<1x256xf32> to vector<1x256xf32>
    %22 = vector.broadcast %21 : vector<1x256xf32> to vector<4x256xf32>
    %23 = vector.extract_strided_slice %19 {offsets = [1, 0], sizes = [1, 256], strides = [1, 1]} : vector<2x256xf32> to vector<1x256xf32>
    %24 = vector.shape_cast %23 : vector<1x256xf32> to vector<1x256xf32>
    %25 = vector.broadcast %24 : vector<1x256xf32> to vector<4x256xf32>
    %26 = tpu.concatenate %22, %25 in 0 : vector<4x256xf32>, vector<4x256xf32> -> vector<8x256xf32>
    %27 = arith.mulf %1, %26 : vector<8x256xf32>
    %28 = arith.addf %27, %0 : vector<8x256xf32>
    %c0_10 = arith.constant 0 : index
    %c0_11 = arith.constant 0 : index
    %29 = vector.load %arg4[%c0_10, %c0_11] : memref<8x256xf32, #tpu.memory_space<vmem>>, vector<8x256xf32>
    tpu.vector_store %arg4[%c0_10, %c0_11], %28 {strides = array<i32>} : memref<8x256xf32, #tpu.memory_space<vmem>>, vector<8x256xf32>,
    return
  }
  func.func @transform_0(%arg0: i32) -> (i32, i32) {
    %c0_i32 = arith.constant 0 : i32
    %c0_i32_0 = arith.constant 0 : i32
    return %arg0, %c0_i32 : i32, i32
  }
  func.func @transform_1(%arg0: i32) -> (i32, i32) {
    %c0_i32 = arith.constant 0 : i32
    %c0_i32_0 = arith.constant 0 : i32
    return %arg0, %c0_i32 : i32, i32
  }
  func.func @transform_2(%arg0: i32) -> (i32, i32) {
    %c0_i32 = arith.constant 0 : i32
    %c0_i32_0 = arith.constant 0 : i32
    %c0_i32_1 = arith.constant 0 : i32
    return %c0_i32, %c0_i32_0 : i32, i32
  }
  func.func @transform_3(%arg0: i32) -> (i32, i32) {
    %c0_i32 = arith.constant 0 : i32
    %c0_i32_0 = arith.constant 0 : i32
    return %arg0, %c0_i32 : i32, i32
  }
}

</mosaic_0001>

<bundles_post_ra>
// kernel: tpu_custom_call.1
= control target key start
LH: loop header
LB: loop body
LE: loop exit
PB: predicated region body
PF: predicated region fallthrough
CT: control target
= control target key end

     0   :  { %8 = vsyncpa [#allocation3], 0  ;;  %s549_s0 = inlined_call_operand.hbm [shape: f32[8,256], index: 0, kind: input, shape index: {}]   ;;  %s550_s1 = inlined_call_operand.hbm [shape: f32[8,256], index: 1, kind: input, shape index: {}]   ;;  %s551_s2 = inlined_call_operand.hbm [shape: f32[256,256], index: 2, kind: input, shape index: {}]   ;;  %s552_s3 = inlined_call_operand.hbm [shape: f32[8,256], index: 3, kind: output, shape index: {}]  }
   0x1   :  { %9 = vsyncpa [#allocation6], 0 }
   0x2   :  { %10 = vsyncpa [#allocation4], 0  ;;  %s457_s12 = smov [#allocation5]   ;;  %s458_s14 = smov [#allocation2]  }
   0x3   :  { %s27_s13 = sshll.u32 %s457_s12, 4  ;;  %s17_s15 = sshll.u32 %s458_s14, 4  ;;  %s28_s13 = int_to_ptr.vmem [resolvable:$true] %s27_s13  ;;  %s18_s15 = int_to_ptr.vmem [resolvable:$true] %s17_s15 }
   0x4   :  { %s363_s18 = scalar_lea.hbm %s550_s1, 256 }
   0x5   :  { %p364_p0 = scmp.ne.s32.totalorder %s550_s1, %s363_s18  ;;  %p367_p1 = scmp.lt.u32.totalorder %s363_s18, %s550_s1 }
   0x7   :  { %p369_p2 = pnand %p367_p1, %p364_p0 }
   0x9   :  { %372 = shalt.err (!%p369_p2)
}
   0xa   :  { %s373_s23 = scalar_lea.vmem %s28_s13, 256  ;;  %p378_p4 = scmp.lt.s32.totalorder %s28_s13, %s28_s13 }
   0xb   :  { %p374_p3 = scmp.ne.s32.totalorder %s28_s13, %s373_s23  ;;  %p379_p5 = scmp.lt.s32.totalorder %s373_s23, %s373_s23 }
   0xd   :  { %p380_p6 = por %p379_p5, %p378_p4 }
   0xf   :  { %p381_p7 = pnand %p380_p6, %p374_p3 }
  0x11   :  { %384 = shalt.err (!%p381_p7)
}
  0x12   :  { %30 = dma.hbm_to_vmem [thread:$0]  %s550_s1, 256, %s28_s13, [#allocation6]  }
  0x13   :  { %s385_s28 = scalar_lea.hbm %s549_s0, 256 }
  0x14   :  { %p386_p8 = scmp.ne.s32.totalorder %s549_s0, %s385_s28  ;;  %p389_p9 = scmp.lt.u32.totalorder %s385_s28, %s549_s0 }
  0x16   :  { %p391_p10 = pnand %p389_p9, %p386_p8 }
  0x18   :  { %394 = shalt.err (!%p391_p10)
}
  0x19   :  { %s395_s6 = scalar_lea.vmem %s18_s15, 256  ;;  %p400_p12 = scmp.lt.s32.totalorder %s18_s15, %s18_s15 }
  0x1a   :  { %p396_p11 = scmp.ne.s32.totalorder %s18_s15, %s395_s6  ;;  %p401_p13 = scmp.lt.s32.totalorder %s395_s6, %s395_s6 }
  0x1c   :  { %p402_p0 = por %p401_p13, %p400_p12 }
  0x1e   :  { %p403_p1 = pnand %p402_p0, %p396_p11 }
  0x20   :  { %406 = shalt.err (!%p403_p1)
}
  0x21   :  { %20 = dma.hbm_to_vmem [thread:$0]  %s549_s0, 256, %s18_s15, [#allocation3]  }
  0x22   :  { %s459_s8 = smov [#allocation7]   ;;  %s407_s12 = scalar_lea.hbm %s551_s2, 8192 }
  0x23   :  { %s36_s9 = sshll.u32 %s459_s8, 4  ;;  %p408_p2 = scmp.ne.s32.totalorder %s551_s2, %s407_s12  ;;  %s37_s9 = int_to_ptr.vmem [resolvable:$true] %s36_s9 }
  0x24   :  { %p411_p3 = scmp.lt.u32.totalorder %s407_s12, %s551_s2 }
  0x26   :  { %p413_p4 = pnand %p411_p3, %p408_p2 }
  0x28   :  { %416 = shalt.err (!%p413_p4)
}
  0x29   :  { %s417_s18 = scalar_lea.vmem %s37_s9, 8192  ;;  %p422_p6 = scmp.lt.s32.totalorder %s37_s9, %s37_s9 }
  0x2a   :  { %p418_p5 = scmp.ne.s32.totalorder %s37_s9, %s417_s18  ;;  %p423_p7 = scmp.lt.s32.totalorder %s417_s18, %s417_s18 }
  0x2c   :  { %p424_p8 = por %p423_p7, %p422_p6 }
  0x2e   :  { %p425_p9 = pnand %p424_p8, %p418_p5 }
  0x30   :  { %428 = shalt.err (!%p425_p9)
}
  0x31   :  { %s460_s0 = smov 256   ;;  %s461_s15 = smov 16  }
  0x32   :  { %42 = dma.hbm_to_vmem [thread:$0]  %s551_s2, 8192, %s37_s9, [#allocation6], %s460_s0, %s460_s0, %s461_s15  }
  0x33   :  { %451 = dma.done.wait [#allocation3], 256  }
  0x34   :  { %452 = vsyncadd [#allocation3], 4294967040 }
  0x35   :  { %453 = dma.done.wait [#allocation6], 8448  }
  0x36   :  { %454 = vsyncadd [#allocation6], 4294958848  ;;  %v97_v0 = vld [vmem:[#allocation7 + $0x8] sm:$0xff]  ;;  %v99_v1 = vld [vmem:[#allocation7 + $0x18] sm:$0xff]  ;;  %vm56_vm0 = vcmask 1043456   ;;  %vm91_vm1 = vcmask 1040384  }
  0x37   :  { %v96_v2 = vld [vmem:[#allocation7] sm:$0xff]  ;;  %v285_v3 = vpack.c.bf16 %v99_v1, %v97_v0  ;;  %v98_v4 = vld [vmem:[#allocation7 + $0x10] sm:$0xff]  ;;  %v101_v5 = vld [vmem:[#allocation7 + $0x28] sm:$0xff]  ;;  %s462_s2 = smov [#allocation8]  }
  0x38   :  { %v103_v6 = vld [vmem:[#allocation7 + $0x38] sm:$0xff]  ;;  %v287_v7 = vpack.c.bf16 %v98_v4, %v96_v2  ;;  %v100_v9 = vld [vmem:[#allocation7 + $0x20] sm:$0xff]  ;;  %v102_v10 = vld [vmem:[#allocation7 + $0x30] sm:$0xff]  ;;  %s273_s21 = sshll.u32 %s462_s2, 4  ;;  %s274_s21 = int_to_ptr.vmem [resolvable:$true] %s273_s21 }
  0x39   :  { %v289_v8 = vpack.c.bf16 %v103_v6, %v101_v5  ;;  %v105_v11 = vld [vmem:[#allocation7 + $0x48] sm:$0xff]  ;;  %286 = vmatprep.subr.bf16.mxu0 %v285_v3  ;;  %v107_v12 = vld [vmem:[#allocation7 + $0x58] sm:$0xff]  ;;  %v291_v13 = vpack.c.bf16 %v102_v10, %v100_v9  ;;  %v104_v15 = vld [vmem:[#allocation7 + $0x40] sm:$0xff]  ;;  %s429_s22 = scalar_lea.vmem %s274_s21, 256  ;;  %p434_p11 = scmp.lt.s32.totalorder %s274_s21, %s274_s21 }
  0x3a   :  { %288 = vmatpush1.bf16.msra.mxu0 %v287_v7  ;;  %v293_v14 = vpack.c.bf16 %v107_v12, %v105_v11  ;;  %v106_v16 = vld [vmem:[#allocation7 + $0x50] sm:$0xff]  ;;  %v109_v17 = vld [vmem:[#allocation7 + $0x68] sm:$0xff]  ;;  %v111_v18 = vld [vmem:[#allocation7 + $0x78] sm:$0xff]  ;;  %p430_p10 = scmp.ne.s32.totalorder %s274_s21, %s429_s22  ;;  %p435_p12 = scmp.lt.s32.totalorder %s429_s22, %s429_s22 }
  0x3b   :  { %290 = vmatprep.subr.bf16.mxu0 %v289_v8  ;;  %v295_v19 = vpack.c.bf16 %v106_v16, %v104_v15  ;;  %v297_v20 = vpack.c.bf16 %v111_v18, %v109_v17  ;;  %v108_v21 = vld [vmem:[#allocation7 + $0x60] sm:$0xff]  ;;  %v110_v22 = vld [vmem:[#allocation7 + $0x70] sm:$0xff]  ;;  %v113_v23 = vld [vmem:[#allocation7 + $0x88] sm:$0xff] }
  0x3c   :  { %v115_v24 = vld [vmem:[#allocation7 + $0x98] sm:$0xff]  ;;  %v299_v25 = vpack.c.bf16 %v110_v22, %v108_v21  ;;  %v112_v27 = vld [vmem:[#allocation7 + $0x80] sm:$0xff]  ;;  %v114_v28 = vld [vmem:[#allocation7 + $0x90] sm:$0xff]  ;;  %p436_p13 = por %p435_p12, %p434_p11 }
  0x3d   :  { %v301_v26 = vpack.c.bf16 %v115_v24, %v113_v23  ;;  %v117_v29 = vld [vmem:[#allocation7 + $0xa8] sm:$0xff]  ;;  %v119_v30 = vld [vmem:[#allocation7 + $0xb8] sm:$0xff]  ;;  %v303_v31 = vpack.c.bf16 %v114_v28, %v112_v27  ;;  %v116_v33 = vld [vmem:[#allocation7 + $0xa0] sm:$0xff] }
  0x3e   :  { %292 = vmatpush1.bf16.msra.mxu0 %v291_v13  ;;  %v305_v32 = vpack.c.bf16 %v119_v30, %v117_v29  ;;  %v118_v34 = vld [vmem:[#allocation7 + $0xb0] sm:$0xff]  ;;  %v121_v35 = vld [vmem:[#allocation7 + $0xc8] sm:$0xff]  ;;  %v123_v36 = vld [vmem:[#allocation7 + $0xd8] sm:$0xff]  ;;  %p437_p0 = pnand %p436_p13, %p430_p10 }
  0x3f   :  { %294 = vmatprep.subr.bf16.mxu0 %v293_v14  ;;  %v307_v37 = vpack.c.bf16 %v118_v34, %v116_v33  ;;  %v309_v38 = vpack.c.bf16 %v123_v36, %v121_v35  ;;  %v120_v39 = vld [vmem:[#allocation7 + $0xc0] sm:$0xff]  ;;  %v122_v40 = vld [vmem:[#allocation7 + $0xd0] sm:$0xff]  ;;  %v519_v41 = vld [vmem:[#allocation2 + $0x8] sm:$0xff] }
  0x40   :  { %v125_v42 = vld [vmem:[#allocation7 + $0xe8] sm:$0xff]  ;;  %v127_v43 = vld [vmem:[#allocation7 + $0xf8] sm:$0xff]  ;;  %v64_v44 = vsel %vm56_vm0, %v519_v41, 0.0  ;;  %v74_v45 = vrot.slane %v519_v41, 4  ;;  %v311_v47 = vpack.c.bf16 %v122_v40, %v120_v39  ;;  %v124_v50 = vld [vmem:[#allocation7 + $0xe0] sm:$0xff] }
  0x41   :  { %v65_v46 = vrot.slane %v64_v44, 4  ;;  %v313_v49 = vpack.c.bf16 %v127_v43, %v125_v42  ;;  %v126_v51 = vld [vmem:[#allocation7 + $0xf0] sm:$0xff]  ;;  %v129_v54 = vld [vmem:[#allocation7 + $0x108] sm:$0xff]  ;;  %v131_v55 = vld [vmem:[#allocation7 + $0x118] sm:$0xff] }
  0x42   :  { %296 = vmatpush1.bf16.msra.mxu0 %v295_v19  ;;  %v84_v48 = vsel %vm56_vm0, %v74_v45, 0.0  ;;  %v525_v56 = vld [vmem:[#allocation2] sm:$0xff]  ;;  %v315_v59 = vpack.c.bf16 %v126_v51, %v124_v50  ;;  %v317_v61 = vpack.c.bf16 %v131_v55, %v129_v54  ;;  %v130_v62 = vld [vmem:[#allocation7 + $0x110] sm:$0xff]  ;;  %v133_v63 = vld [vmem:[#allocation7 + $0x128] sm:$0xff] }
  0x43   :  { %298 = vmatprep.subr.bf16.mxu0 %v297_v20  ;;  %v66_v52 = vadd.f32 %v65_v46, %v64_v44  ;;  %v85_v53 = vrot.slane %v84_v48, 4  ;;  %v128_v60 = vld [vmem:[#allocation7 + $0x100] sm:$0xff]  ;;  %v135_v0 = vld [vmem:[#allocation7 + $0x138] sm:$0xff]  ;;  %v73_v3 = vrot.slane %v525_v56, 4  ;;  %v134_v9 = vld [vmem:[#allocation7 + $0x130] sm:$0xff]  ;;  %v57_v12 = vsel %vm56_vm0, %v525_v56, 0.0 }
  0x44   :  { %v319_v6 = vpack.c.bf16 %v130_v62, %v128_v60  ;;  %v321_v7 = vpack.c.bf16 %v135_v0, %v133_v63  ;;  %v132_v8 = vld [vmem:[#allocation7 + $0x120] sm:$0xff]  ;;  %v137_v14 = vld [vmem:[#allocation7 + $0x148] sm:$0xff]  ;;  %v139_v15 = vld [vmem:[#allocation7 + $0x158] sm:$0xff]  ;;  %v58_v18 = vrot.slane %v57_v12, 4 }
  0x45   :  { %v67_v57 = vrot.slane %v66_v52, 2  ;;  %v86_v58 = vadd.f32 %v85_v53, %v84_v48  ;;  %v77_v13 = vsel %vm56_vm0, %v73_v3, 0.0  ;;  %v323_v17 = vpack.c.bf16 %v134_v9, %v132_v8  ;;  %v136_v21 = vld [vmem:[#allocation7 + $0x140] sm:$0xff]  ;;  %v138_v22 = vld [vmem:[#allocation7 + $0x150] sm:$0xff]  ;;  %v141_v24 = vld [vmem:[#allocation7 + $0x168] sm:$0xff] }
  0x46   :  { %300 = vmatpush1.bf16.msra.mxu0 %v299_v25  ;;  %v78_v19 = vrot.slane %v77_v13, 4  ;;  %v325_v20 = vpack.c.bf16 %v139_v15, %v137_v14  ;;  %v143_v25 = vld [vmem:[#allocation7 + $0x178] sm:$0xff]  ;;  %v327_v27 = vpack.c.bf16 %v138_v22, %v136_v21  ;;  %v59_v28 = vadd.f32 %v58_v18, %v57_v12  ;;  %v145_v33 = vld [vmem:[#allocation7 + $0x188] sm:$0xff]  ;;  %v144_v39 = vld [vmem:[#allocation7 + $0x180] sm:$0xff] }
  0x47   :  { %302 = vmatprep.subr.bf16.mxu0 %v301_v26  ;;  %v68_v1 = vadd.f32 %v67_v57, %v66_v52  ;;  %v87_v2 = vrot.slane %v86_v58, 2  ;;  %v329_v30 = vpack.c.bf16 %v143_v25, %v141_v24  ;;  %v147_v34 = vld [vmem:[#allocation7 + $0x198] sm:$0xff]  ;;  %v146_v40 = vld [vmem:[#allocation7 + $0x190] sm:$0xff]  ;;  %v149_v42 = vld [vmem:[#allocation7 + $0x1a8] sm:$0xff] }
  0x48   :  { %v79_v29 = vadd.f32 %v78_v19, %v77_v13  ;;  %v60_v36 = vrot.slane %v59_v28, 2  ;;  %v151_v43 = vld [vmem:[#allocation7 + $0x1b8] sm:$0xff]  ;;  %v335_v44 = vpack.c.bf16 %v146_v40, %v144_v39  ;;  %v148_v48 = vld [vmem:[#allocation7 + $0x1a0] sm:$0xff]  ;;  %v153_v50 = vld [vmem:[#allocation7 + $0x1c8] sm:$0xff] }
  0x49   :  { %v69_v4 = vrot.slane %v68_v1, 1  ;;  %v88_v5 = vadd.f32 %v87_v2, %v86_v58  ;;  %v155_v51 = vld [vmem:[#allocation7 + $0x1d8] sm:$0xff]  ;;  %v152_v57 = vld [vmem:[#allocation7 + $0x1c0] sm:$0xff]  ;;  %v154_v58 = vld [vmem:[#allocation7 + $0x1d0] sm:$0xff] }
  0x4a   :  { %304 = vmatpush1.bf16.msra.mxu0 %v303_v31  ;;  %v140_v31 = vld [vmem:[#allocation7 + $0x160] sm:$0xff]  ;;  %v61_v45 = vadd.f32 %v60_v36, %v59_v28  ;;  %v341_v55 = vpack.c.bf16 %v155_v51, %v153_v50  ;;  %v159_v60 = vld [vmem:[#allocation7 + $0x1f8] sm:$0xff]  ;;  %v158_v2 = vld [vmem:[#allocation7 + $0x1f0] sm:$0xff] }
  0x4b   :  { %306 = vmatprep.subr.bf16.mxu0 %v305_v32  ;;  %v70_v10 = vadd.f32 %v69_v4, %v68_v1  ;;  %v89_v11 = vrot.slane %v88_v5, 1  ;;  %v142_v32 = vld [vmem:[#allocation7 + $0x170] sm:$0xff]  ;;  %v156_v1 = vld [vmem:[#allocation7 + $0x1e0] sm:$0xff]  ;;  %v55_v25 = vld [vmem:[#allocation5 + $0x8] sm:$0xff] }
  0x4c   :  { %v331_v35 = vpack.c.bf16 %v142_v32, %v140_v31  ;;  %v62_v53 = vrot.slane %v61_v45, 1  ;;  %v347_v3 = vpack.c.bf16 %v158_v2, %v156_v1  ;;  %v54_v22 = vld [vmem:[#allocation5] sm:$0xff] }
  0x4d   :  { %v90_v16 = vadd.f32 %v89_v11, %v88_v5 }
  0x4e   :  { %308 = vmatpush1.bf16.msra.mxu0 %v307_v37  ;;  %v80_v37 = vrot.slane %v79_v29, 2  ;;  %v63_v62 = vadd.f32 %v62_v53, %v61_v45 }
  0x4f   :  { %310 = vmatprep.subr.bf16.mxu0 %v309_v38  ;;  %v93_v23 = vsel %vm91_vm1, %v70_v10, %v90_v16  ;;  %v333_v38 = vpack.c.bf16 %v147_v34, %v145_v33  ;;  %v243_v16 = vlaneseq }
  0x50   :  { %v95_v26 = vmul.f32 0.25, %v93_v23  ;;  %v81_v46 = vadd.f32 %v80_v37, %v79_v29 }
  0x52   :  { %312 = vmatpush1.bf16.msra.mxu0 %v311_v47  ;;  %224 = vmatprep.mubr.f32.mxu0 %v95_v26  ;;  %v337_v47 = vpack.c.bf16 %v151_v43, %v149_v42  ;;  %v82_v54 = vrot.slane %v81_v46, 1 }
  0x53   :  { %314 = vmatprep.subr.bf16.mxu0 %v313_v49  ;;  %v150_v49 = vld [vmem:[#allocation7 + $0x1b0] sm:$0xff] }
  0x54   :  { %v339_v52 = vpack.c.bf16 %v150_v49, %v148_v48  ;;  %v83_v63 = vadd.f32 %v82_v54, %v81_v46 }
  0x56   :  { %316 = vmatpush1.bf16.msra.mxu0 %v315_v59  ;;  %v157_v59 = vld [vmem:[#allocation7 + $0x1e8] sm:$0xff]  ;;  %v92_v4 = vsel %vm91_vm1, %v63_v62, %v83_v63 }
  0x57   :  { %318 = vmatprep.subr.bf16.mxu0 %v317_v61  ;;  %v343_v61 = vpack.c.bf16 %v154_v58, %v152_v57  ;;  %v345_v0 = vpack.c.bf16 %v159_v60, %v157_v59  ;;  %v94_v5 = vmul.f32 0.25, %v92_v4 }
  0x5a   :  { %320 = vmatpush1.bf16.msra.mxu0 %v319_v6 }
  0x5b   :  { %322 = vmatprep.subr.bf16.mxu0 %v321_v7 }
  0x5e   :  { %324 = vmatpush1.bf16.msra.mxu0 %v323_v17  ;;  %v244_v17 = vshrl.u32 %v243_v16, 7 }
  0x5f   :  { %326 = vmatprep.subr.bf16.mxu0 %v325_v20 }
  0x60   :  { %v245_v18 = vsub.s32 0, %v244_v17  ;;  %v253_v19 = vsub.s32 1, %v244_v17 }
  0x62   :  { %328 = vmatpush1.bf16.msra.mxu0 %v327_v27 }
  0x63   :  { %330 = vmatprep.subr.bf16.mxu0 %v329_v30 }
  0x66   :  { %332 = vmatpush1.bf16.msra.mxu0 %v331_v35 }
  0x67   :  { %334 = vmatprep.subr.bf16.mxu0 %v333_v38 }
  0x6a   :  { %336 = vmatpush1.bf16.msra.mxu0 %v335_v44 }
  0x6b   :  { %338 = vmatprep.subr.bf16.mxu0 %v337_v47 }
  0x6e   :  { %340 = vmatpush1.bf16.msra.mxu0 %v339_v52 }
  0x6f   :  { %342 = vmatprep.subr.bf16.mxu0 %v341_v55 }
  0x72   :  { %344 = vmatpush1.bf16.msra.mxu0 %v343_v61 }
  0x73   :  { %346 = vmatprep.subr.bf16.mxu0 %v345_v0 }
  0x76   :  { %348 = vmatpush1.bf16.msra.mxu0 %v347_v3 }
  0x79   :  { %225 = vmatmul.mubr.f32.vlgmr.msra.gmra.mrb[0].mxu0 %v94_v5 }
 0x14c   :  { %v226_v6 = vpop.f32.mrb[0].mxu0 }
 0x14d   :  { %v227_v7 = vadd.f32 -0.01521514, %v226_v6  ;;  %v228_v8 = vpop.f32.mrb[1].mxu0 }
 0x14e   :  { %v229_v9 = vadd.f32 -0.01521514, %v228_v8 }
 0x14f   :  { %v283_v10 = vmul.f32 -1.442695, %v227_v7 }
 0x150   :  { %v284_v11 = vmul.f32 -1.442695, %v229_v9 }
 0x151   :  { %355 = vpow2.f32 %v283_v10 }
 0x152   :  { %357 = vpow2.f32 %v284_v11 }
 0x15b   :  { %v356_v12 = vpop.eup %355 }
 0x15c   :  { %v358_v13 = vpop.eup %357  ;;  %v237_v14 = vadd.f32 1.0, %v356_v12 }
 0x15d   :  { %v238_v15 = vadd.f32 1.0, %v358_v13 }
 0x15e   :  { %359 = vrcp.f32 %v237_v14 }
 0x15f   :  { %361 = vrcp.f32 %v238_v15 }
 0x168   :  { %v360_v20 = vpop.eup %359 }
 0x169   :  { %v362_v21 = vpop.eup %361  ;;  %v246_v23 = vrot.slane %v360_v20, %v245_v18  ;;  %v254_v24 = vrot.slane %v360_v20, %v253_v19 }
 0x16a   :  { %v250_v26 = vrot.slane %v362_v21, %v245_v18  ;;  %v258_v27 = vrot.slane %v362_v21, %v253_v19 }
 0x16b   :  { %v259_v28 = vsel %vm56_vm0, %v246_v23, %v254_v24 }
 0x16c   :  { %v260_v29 = vsel %vm56_vm0, %v250_v26, %v258_v27  ;;  %v261_v30 = vmul.f32 %v259_v28, %v54_v22 }
 0x16d   :  { %v262_v31 = vmul.f32 %v260_v29, %v55_v25 }
 0x16e   :  { %v263_v32 = vadd.f32 %v261_v30, %v525_v56 }
 0x16f   :  { %v264_v33 = vadd.f32 %v262_v31, %v519_v41 }
 0x170   :  { %265 = vst [vmem:[#allocation8] sm:$0xff] %v263_v32 }
 0x171   :  { %266 = vst [vmem:[#allocation8 + $0x8] sm:$0xff] %v264_v33 }
 0x172   :  { %440 = shalt.err (!%p437_p0)
}
 0x173   :  { %s441_s25 = scalar_lea.hbm %s552_s3, 256 }
 0x174   :  { %p442_p1 = scmp.ne.s32.totalorder %s552_s3, %s441_s25  ;;  %p445_p2 = scmp.lt.u32.totalorder %s441_s25, %s552_s3 }
 0x176   :  { %p447_p3 = pnand %p445_p2, %p442_p1 }
 0x178   :  { %450 = shalt.err (!%p447_p3)
}
 0x179   :  { %276 = dma.vmem_to_hbm [thread:$0]  %s274_s21, 256, %s552_s3, [#allocation4]  }
 0x17a   :  { %455 = dma.done.wait [#allocation4], 256  }
 0x17b   :  { %456 = vsyncadd [#allocation4], 4294967040 }
 0x17c   :  { %280 = vsyncpa [#allocation3], 1 }
 0x17d   :  { %281 = vsyncpa [#allocation6], 1 }
 0x17e   :  { %282 = vsyncpa [#allocation4], 1 }

</bundles_post_ra>
